<compile_context>
chip_gen: v7x
topology: tpu7x:2x2x1
jax: 0.10.0
libtpu: 0.0.40
codegen_flags: <defaults>
</compile_context>

<pallas_src>
import functools

import jax
import jax.numpy as jnp
from jax.experimental import pallas as pl
from jax.experimental.pallas import tpu as pltpu


def _round_up(x: int, m: int) -> int:
    return ((x + m - 1) // m) * m


def _ce_kernel(x_ref, t_ref, o_ref, sumexp_ref, picked_ref, *,
               tile_n, tile_c, n_total, c_total, mask_rows, mask_cols):
    i = pl.program_id(0)                  # row-tile index   ("parallel")
    j = pl.program_id(1)                  # class-tile index ("arbitrary", innermost)
    nj = pl.num_programs(1)

    @pl.when(j == 0)
    def _init():
        sumexp_ref[...] = jnp.zeros_like(sumexp_ref)
        picked_ref[...] = jnp.zeros_like(picked_ref)

    x = x_ref[...].astype(jnp.float32)                      # (tn, tc)
    t = t_ref[...]                                          # (tn, 1) int32

    # j-invariant lane iota; the per-tile shift lives on the (tn,1) targets.
    lane_ids = jax.lax.broadcasted_iota(jnp.int32, (tile_n, tile_c), 1)
    t_local = t - j * tile_c                                # (tn, 1)

    # Per-row picked logit (lane-only select + reduce). Padded / out-of-range
    # rows carry the sentinel target -1 so no lane ever matches -> they
    # contribute exactly 0 even though tail-row block contents are undefined.
    picked_ref[...] += jnp.sum(
        jnp.where(lane_ids == t_local, x, 0.0), axis=1, keepdims=True)

    # Running per-row sum of exp(x). Only the final class tile can contain
    # out-of-bounds lanes; gate the mask so interior tiles pay no extra
    # compare/select on the VALU.
    if mask_cols:
        last_j = (c_total + tile_c - 1) // tile_c - 1       # static python int
        c_rem = c_total - last_j * tile_c                   # valid lanes in tail tile

        @pl.when(j != last_j)
        def _interior():
            sumexp_ref[...] += jnp.sum(jnp.exp(x), axis=1, keepdims=True)

        @pl.when(j == last_j)
        def _tail():
            ex = jnp.where(lane_ids < c_rem, jnp.exp(x), 0.0)
            sumexp_ref[...] += jnp.sum(ex, axis=1, keepdims=True)
    else:
        sumexp_ref[...] += jnp.sum(jnp.exp(x), axis=1, keepdims=True)

    @pl.when(j == nj - 1)
    def _finalize():
        lse = jnp.log(sumexp_ref[...])                      # (tn, 1)
        loss_rows = lse - picked_ref[...]                   # (tn, 1)
        if mask_rows:
            row_ids = i * tile_n + jax.lax.broadcasted_iota(
                jnp.int32, (tile_n, 1), 0)
            loss_rows = jnp.where(row_ids < n_total, loss_rows, 0.0)
        partial = jnp.sum(loss_rows, keepdims=True)         # (1, 1)
        # lane-dense, unmasked store of this row tile's partial loss sum
        o_ref[...] = jnp.broadcast_to(partial.reshape(1, 1, 1), o_ref.shape)


def best_cross_entropy_loss_ever(logits: jax.Array, target: jax.Array, *,
                                 tile_n: int = 512, tile_c: int = 2048) -> jax.Array:
    """logits: (N, C) float, target: (N,) int  ->  scalar float32 mean loss."""
    n, c = logits.shape

    # --- tile selection (sublane/lane aligned; logits are NOT padded) ---
    if n <= 8:
        tn = n                                              # full (small) row dim
    else:
        tn = min(tile_n, _round_up(n, 8))
        # ensure >= 2 row tiles so the "parallel" axis spans both v7x TCs
        tn = min(tn, max(8, _round_up((n + 1) // 2, 8)))
        tn = max(8, (tn // 8) * 8)                          # sublane multiple
    if c <= 128:
        tc = c                                              # full (small) class dim
    else:
        tc = min(tile_c, _round_up(c, 128))
        tc = max(128, (tc // 128) * 128)                    # lane multiple

    num_row_tiles = pl.cdiv(n, tn)
    num_col_tiles = pl.cdiv(c, tc)
    grid = (num_row_tiles, num_col_tiles)
    mask_rows = (n % tn) != 0
    mask_cols = (c % tc) != 0

    # Logits stream in native dtype with no wrapper pad; only the tiny targets
    # array is padded (sentinel -1 so padded rows never match any lane).
    t = target.astype(jnp.int32)
    n_rows_padded = num_row_tiles * tn
    if n_rows_padded != n:
        t = jnp.pad(t, ((0, n_rows_padded - n),), constant_values=-1)
    t2d = t.reshape(n_rows_padded, 1)

    kernel = functools.partial(
        _ce_kernel, tile_n=tn, tile_c=tc, n_total=n, c_total=c,
        mask_rows=mask_rows, mask_cols=mask_cols)

    # Budget VMEM from the f32 working set (in-kernel upcast / exp), not the
    # wire dtype; 32 MiB floor is within scoped limits on v5e / v6e / v7x.
    block_f32_bytes = tn * tc * 4
    vmem_limit = int(min(64 << 20, max(32 << 20, 2 * block_f32_bytes + (8 << 20))))

    itemsize = jnp.dtype(logits.dtype).itemsize
    cost = pl.CostEstimate(
        flops=5 * n * c,
        transcendentals=n * c,
        bytes_accessed=n * c * itemsize + n_rows_padded * 4
        + num_row_tiles * 8 * 128 * 4,
    )

    partials = pl.pallas_call(
        kernel,
        out_shape=jax.ShapeDtypeStruct((num_row_tiles, 8, 128), jnp.float32),
        grid_spec=pltpu.PrefetchScalarGridSpec(
            num_scalar_prefetch=0,
            grid=grid,
            in_specs=[
                pl.BlockSpec((tn, tc), lambda i, j: (i, j)),   # logits tile
                pl.BlockSpec((tn, 1), lambda i, j: (i, 0)),    # targets column
            ],
            out_specs=pl.BlockSpec((1, 8, 128), lambda i, j: (i, 0, 0)),
            scratch_shapes=[
                pltpu.VMEM((tn, 1), jnp.float32),   # running sum-of-exp per row
                pltpu.VMEM((tn, 1), jnp.float32),   # per-row picked logit
            ],
        ),
        compiler_params=pltpu.CompilerParams(
            dimension_semantics=("parallel", "arbitrary"),
            vmem_limit_bytes=vmem_limit,
        ),
        cost_estimate=cost,
    )(logits, t2d)

    # each row tile broadcast its scalar partial across its (8, 128) block
    return jnp.sum(partials[:, 0, 0]) / jnp.float32(n)


def _reference(logits, target):
    x = logits.astype(jnp.float32)
    lse = jnp.log(jnp.sum(jnp.exp(x), axis=1))
    picked = x[jnp.arange(x.shape[0]), target]
    return jnp.sum(-picked + lse) / jnp.float32(x.shape[0])


if __name__ == "__main__":
    key = jax.random.PRNGKey(0)

    # 1) small shape consistent with the module's toy usage
    k1, k2, key = jax.random.split(key, 3)
    n, c = 8, 32
    logits = jax.random.normal(k1, (n, c), dtype=jnp.float32)
    target = jax.random.randint(k2, (n,), 0, c, dtype=jnp.int32)
    loss = jax.block_until_ready(best_cross_entropy_loss_ever(logits, target))
    ref = _reference(logits, target)
    assert jnp.allclose(loss, ref, rtol=1e-5, atol=1e-4), (loss, ref)

    # 2) non-divisible shapes + multi-tile 2-D grid (exercises ragged boundary
    #    blocks with in-kernel row/col masking — no wrapper pad of logits)
    k1, k2, key = jax.random.split(key, 3)
    n, c = 50, 300
    logits = jax.random.normal(k1, (n, c), dtype=jnp.float32)
    target = jax.random.randint(k2, (n,), 0, c, dtype=jnp.int32)
    loss = jax.block_until_ready(
        best_cross_entropy_loss_ever(logits, target, tile_n=16, tile_c=128))
    ref = _reference(logits, target)
    assert jnp.allclose(loss, ref, rtol=1e-5, atol=1e-4), (loss, ref)

    # 3) bf16 logits stay bf16 on the wire; upcast happens in-kernel
    k1, k2, key = jax.random.split(key, 3)
    n, c = 64, 256
    logits = jax.random.normal(k1, (n, c), dtype=jnp.float32).astype(jnp.bfloat16)
    target = jax.random.randint(k2, (n,), 0, c, dtype=jnp.int32)
    loss = jax.block_until_ready(
        best_cross_entropy_loss_ever(logits, target, tile_n=32, tile_c=128))
    ref = _reference(logits, target)
    assert jnp.allclose(loss, ref, rtol=1e-3, atol=1e-3), (loss, ref)

    print("KERNEL_OK")
</pallas_src>

<mosaic_0001>
module attributes {stable_mosaic.version = 11 : i64} {
  func.func @_ce_kernel(%arg0: i32, %arg1: i32, %arg2: memref<8x32xf32, #tpu.memory_space<vmem>>, %arg3: memref<8x1xi32, #tpu.memory_space<vmem>>, %arg4: memref<1x8x128xf32, #tpu.memory_space<vmem>>, %arg5: memref<8x1xf32, #tpu.memory_space<vmem>>, %arg6: memref<8x1xf32, #tpu.memory_space<vmem>>) attributes {dimension_semantics = [#tpu.dimension_semantics<parallel>, #tpu.dimension_semantics<arbitrary>], iteration_bounds = array<i64: 1, 1>, scalar_prefetch = 0 : i64, scratch_operands = 2 : i64, tpu.core_type = #tpu.core_type<tc>, window_params = [{transform_indices = @transform_0, window_bounds = array<i64: 8, 32>}, {transform_indices = @transform_1, window_bounds = array<i64: 8, 1>}, {transform_indices = @transform_2, window_bounds = array<i64: 1, 8, 128>}]} {
    %c0_i32 = arith.constant 0 : i32
    %0 = arith.cmpi eq, %arg1, %c0_i32 : i32
    %1 = arith.extui %0 : i1 to i32
    %c0_i32_0 = arith.constant 0 : i32
    %2 = arith.cmpi ne, %1, %c0_i32_0 : i32
    scf.if %2 {
      %cst_16 = arith.constant 0.000000e+00 : f32
      %27 = vector.broadcast %cst_16 : f32 to vector<8x1xf32>
      %c0_17 = arith.constant 0 : index
      %c0_18 = arith.constant 0 : index
      %28 = vector.load %arg5[%c0_17, %c0_18] : memref<8x1xf32, #tpu.memory_space<vmem>>, vector<8x1xf32>
      tpu.vector_store %arg5[%c0_17, %c0_18], %27 {strides = array<i32>} : memref<8x1xf32, #tpu.memory_space<vmem>>, vector<8x1xf32>,
      %cst_19 = arith.constant 0.000000e+00 : f32
      %29 = vector.broadcast %cst_19 : f32 to vector<8x1xf32>
      %c0_20 = arith.constant 0 : index
      %c0_21 = arith.constant 0 : index
      %30 = vector.load %arg6[%c0_20, %c0_21] : memref<8x1xf32, #tpu.memory_space<vmem>>, vector<8x1xf32>
      tpu.vector_store %arg6[%c0_20, %c0_21], %29 {strides = array<i32>} : memref<8x1xf32, #tpu.memory_space<vmem>>, vector<8x1xf32>,
    } else {
    }
    %c0 = arith.constant 0 : index
    %c0_1 = arith.constant 0 : index
    %3 = vector.load %arg2[%c0, %c0_1] : memref<8x32xf32, #tpu.memory_space<vmem>>, vector<8x32xf32>
    %c0_2 = arith.constant 0 : index
    %c0_3 = arith.constant 0 : index
    %4 = vector.load %arg3[%c0_2, %c0_3] : memref<8x1xi32, #tpu.memory_space<vmem>>, vector<8x1xi32>
    %5 = tpu.iota {dimensions = array<i32: 1>} : vector<8x32xi32>
    %c32_i32 = arith.constant 32 : i32
    %6 = arith.muli %arg1, %c32_i32 : i32
    %7 = vector.broadcast %6 : i32 to vector<8x1xi32>
    %8 = arith.subi %4, %7 : vector<8x1xi32>
    %c0_4 = arith.constant 0 : index
    %c0_5 = arith.constant 0 : index
    %9 = vector.load %arg6[%c0_4, %c0_5] : memref<8x1xf32, #tpu.memory_space<vmem>>, vector<8x1xf32>
    %10 = vector.broadcast %8 : vector<8x1xi32> to vector<8x32xi32>
    %11 = arith.cmpi eq, %5, %10 : vector<8x32xi32>
    %cst = arith.constant 0.000000e+00 : f32
    %12 = vector.broadcast %cst : f32 to vector<8x32xf32>
    %13 = arith.select %11, %3, %12 : vector<8x32xi1>, vector<8x32xf32>
    %cst_6 = arith.constant dense<0.000000e+00> : vector<8xf32>
    %14 = vector.multi_reduction <add>, %13, %cst_6 [1] : vector<8x32xf32> to vector<8xf32>
    %15 = vector.shape_cast %14 : vector<8xf32> to vector<8x1xf32>
    %16 = arith.addf %9, %15 : vector<8x1xf32>
    %c0_7 = arith.constant 0 : index
    %c0_8 = arith.constant 0 : index
    %17 = vector.load %arg6[%c0_7, %c0_8] : memref<8x1xf32, #tpu.memory_space<vmem>>, vector<8x1xf32>
    tpu.vector_store %arg6[%c0_7, %c0_8], %16 {strides = array<i32>} : memref<8x1xf32, #tpu.memory_space<vmem>>, vector<8x1xf32>,
    %c0_9 = arith.constant 0 : index
    %c0_10 = arith.constant 0 : index
    %18 = vector.load %arg5[%c0_9, %c0_10] : memref<8x1xf32, #tpu.memory_space<vmem>>, vector<8x1xf32>
    %19 = math.exp %3 : vector<8x32xf32>
    %cst_11 = arith.constant dense<0.000000e+00> : vector<8xf32>
    %20 = vector.multi_reduction <add>, %19, %cst_11 [1] : vector<8x32xf32> to vector<8xf32>
    %21 = vector.shape_cast %20 : vector<8xf32> to vector<8x1xf32>
    %22 = arith.addf %18, %21 : vector<8x1xf32>
    %c0_12 = arith.constant 0 : index
    %c0_13 = arith.constant 0 : index
    %23 = vector.load %arg5[%c0_12, %c0_13] : memref<8x1xf32, #tpu.memory_space<vmem>>, vector<8x1xf32>
    tpu.vector_store %arg5[%c0_12, %c0_13], %22 {strides = array<i32>} : memref<8x1xf32, #tpu.memory_space<vmem>>, vector<8x1xf32>,
    %c0_i32_14 = arith.constant 0 : i32
    %24 = arith.cmpi eq, %arg1, %c0_i32_14 : i32
    %25 = arith.extui %24 : i1 to i32
    %c0_i32_15 = arith.constant 0 : i32
    %26 = arith.cmpi ne, %25, %c0_i32_15 : i32
    scf.if %26 {
      %c0_16 = arith.constant 0 : index
      %c0_17 = arith.constant 0 : index
      %27 = vector.load %arg5[%c0_16, %c0_17] : memref<8x1xf32, #tpu.memory_space<vmem>>, vector<8x1xf32>
      %28 = math.log %27 : vector<8x1xf32>
      %c0_18 = arith.constant 0 : index
      %c0_19 = arith.constant 0 : index
      %29 = vector.load %arg6[%c0_18, %c0_19] : memref<8x1xf32, #tpu.memory_space<vmem>>, vector<8x1xf32>
      %30 = arith.subf %28, %29 : vector<8x1xf32>
      %31 = vector.shape_cast %30 : vector<8x1xf32> to vector<1x8x1xf32>
      %cst_20 = arith.constant dense<0.000000e+00> : vector<1xf32>
      %32 = vector.multi_reduction <add>, %31, %cst_20 [1, 2] : vector<1x8x1xf32> to vector<1xf32>
      %33 = vector.shape_cast %32 : vector<1xf32> to vector<1x1x1xf32>
      %34 = vector.extract %33[0, 0, 0] : f32 from vector<1x1x1xf32>
      %35 = vector.broadcast %34 : f32 to vector<1x1xf32>
      %36 = vector.shape_cast %35 : vector<1x1xf32> to vector<1x1x1xf32>
      %37 = vector.shape_cast %36 : vector<1x1x1xf32> to vector<1x1x1xf32>
      %38 = vector.broadcast %37 : vector<1x1x1xf32> to vector<1x8x128xf32>
      %c0_21 = arith.constant 0 : index
      %c0_22 = arith.constant 0 : index
      %c0_23 = arith.constant 0 : index
      %39 = vector.load %arg4[%c0_21, %c0_22, %c0_23] : memref<1x8x128xf32, #tpu.memory_space<vmem>>, vector<1x8x128xf32>
      tpu.vector_store %arg4[%c0_21, %c0_22, %c0_23], %38 {strides = array<i32>} : memref<1x8x128xf32, #tpu.memory_space<vmem>>, vector<1x8x128xf32>,
    } else {
    }
    return
  }
  func.func @transform_0(%arg0: i32, %arg1: i32) -> (i32, i32) {
    %c0_i32 = arith.constant 0 : i32
    return %arg0, %arg1 : i32, i32
  }
  func.func @transform_1(%arg0: i32, %arg1: i32) -> (i32, i32) {
    %c0_i32 = arith.constant 0 : i32
    %c0_i32_0 = arith.constant 0 : i32
    return %arg0, %c0_i32 : i32, i32
  }
  func.func @transform_2(%arg0: i32, %arg1: i32) -> (i32, i32, i32) {
    %c0_i32 = arith.constant 0 : i32
    %c0_i32_0 = arith.constant 0 : i32
    %c0_i32_1 = arith.constant 0 : i32
    return %arg0, %c0_i32, %c0_i32_0 : i32, i32, i32
  }
}

</mosaic_0001>

<bundles_post_ra>
// kernel: tpu_custom_call.1
= control target key start
LH: loop header
LB: loop body
LE: loop exit
PB: predicated region body
PF: predicated region fallthrough
CT: control target
= control target key end

     0   :  { %s156_s0 = inlined_call_operand.vmem [shape: f32[8,32], index: 0, kind: input, shape index: {}]   ;;  %s157_s1 = inlined_call_operand.vmem [shape: s32[8,1], index: 1, kind: input, shape index: {}]   ;;  %s158_s2 = inlined_call_operand.hbm [shape: f32[1,8,128], index: 2, kind: output, shape index: {}]  }
   0x1   :  { %v20_v0 = vld [vmem:[%s157_s1] sm:$0xff] }
   0x2   :  { %7 = vsyncpa [#allocation5], 0  ;;  %v115_v1 = vmov 0   ;;  %v19_v2 = vld [vmem:[%s156_s0] sm:$0xff]  ;;  %vm32_vm0 = vcmask 261120   ;;  %vm16_vm1 = vcmask 7168   ;;  %v21_v7 = vlaneseq }
   0x3   :  { %86 = vset.pattern.permute.xlu0 %v115_v1  ;;  %v40_v3 = vmul.f32 1.442695, %v19_v2  ;;  %v116_v6 = vmov 0.0   ;;  %s117_s0 = smov [#allocation4]  }
   0x4   :  { %28 = vperm.xlu0 %86, %v20_v0   ;;  %17 = vst.msk [vmem:[#allocation2] sm:$0xff] %vm16_vm1, %v116_v6  ;;  %18 = vst.msk [vmem:[#allocation3] sm:$0xff] %vm16_vm1, %v116_v6  ;;  %v22_v8 = vand.u32 127, %v21_v7  ;;  %s73_s1 = sshll.u32 %s117_s0, 4  ;;  %s74_s1 = int_to_ptr.vmem [resolvable:$true] %s73_s1 }
   0x5   :  { %87 = vpow2.f32 %v40_v3  ;;  %s91_s14 = scalar_lea.vmem %s74_s1, 128  ;;  %p96_p1 = scmp.lt.s32.totalorder %s74_s1, %s74_s1 }
   0x6   :  { %p92_p0 = scmp.ne.s32.totalorder %s74_s1, %s91_s14  ;;  %p97_p2 = scmp.lt.s32.totalorder %s91_s14, %s91_s14 }
   0x8   :  { %p98_p3 = por %p97_p2, %p96_p1 }
   0xa   :  { %p99_p4 = pnand %p98_p3, %p92_p0 }
   0xb   :  { %v39_v12 = vld [vmem:[#allocation2] sm:$0xff]  ;;  %v26_v16 = vld [vmem:[#allocation3] sm:$0xff] }
   0xf   :  { %v88_v4 = vpop.eup %87 }
  0x10   :  { %v42_v5 = vsel %vm32_vm0, %v88_v4, 0.0 }
  0x23   :  { %43 = vadd.xlane.f32.xlu0 %v42_v5 }
  0x83   :  { %v29_v9 = vpop.permute.xlu0 %28 }
  0x84   :  { %vm30_vm2 = vcmp.eq.s32.totalorder %v22_v8, %v29_v9 }
  0x85   :  { %v31_v10 = vsel %vm30_vm2, %v19_v2, 0.0 }
  0x86   :  { %v33_v11 = vsel %vm32_vm0, %v31_v10, 0.0 }
  0x87   :  { %34 = vadd.xlane.f32.xlu1 %v33_v11 }
  0xb0   :  { %v44_v13 = vpop.xlane.xlu0 %43 }
  0xb1   :  { %v45_v14 = vadd.f32 %v44_v13, %v39_v12 }
  0xb3   :  { %46 = vst.msk [vmem:[#allocation2] sm:$0xff] %vm16_vm1, %v45_v14 }
  0xba   :  { %v50_v15 = vld [vmem:[#allocation2] sm:$0xff] }
  0xbb   :  { %89 = vlog2.f32 %v50_v15 }
  0xc5   :  { %v90_v19 = vpop.eup %89 }
  0xc6   :  { %v52_v20 = vmul.f32 0.6931472, %v90_v19 }
 0x114   :  { %v35_v17 = vpop.xlane.xlu1 %34 }
 0x115   :  { %v36_v18 = vadd.f32 %v35_v17, %v26_v16 }
 0x117   :  { %38 = vst.msk [vmem:[#allocation3] sm:$0xff] %vm16_vm1, %v36_v18 }
 0x11e   :  { %v53_v21 = vld [vmem:[#allocation3] sm:$0xff] }
 0x11f   :  { %v54_v22 = vsub.f32 %v52_v20, %v53_v21 }
 0x121   :  { %v55_v23 = vsel %vm16_vm1, %v54_v22, 0.0 }
 0x122   :  { %56 = vadd.xlane.f32.xlu1 %v55_v23 }
 0x1af   :  { %v57_v24 = vpop.xlane.xlu1 %56 }
 0x1b0   :  { %v58_v25 = vrot.slane %v57_v24, 4 }
 0x1b2   :  { %v59_v26 = vadd.f32 %v58_v25, %v57_v24 }
 0x1b4   :  { %v60_v27 = vrot.slane %v59_v26, 2 }
 0x1b6   :  { %v61_v28 = vadd.f32 %v60_v27, %v59_v26 }
 0x1b8   :  { %v62_v29 = vrot.slane %v61_v28, 1 }
 0x1ba   :  { %v63_v30 = vadd.f32 %v62_v29, %v61_v28 }
 0x1bc   :  { %81 = vpush %v63_v30 }
 0x1ed   :  { %s82_s13 = spop %81 }
 0x1ee   :  { %v65_v31 = vstv %s82_s13 }
 0x1ef   :  { %66 = vst [vmem:[#allocation4] sm:$0xff] %v65_v31 }
 0x1f0   :  { %102 = shalt.err (!%p99_p4)
}
 0x1f1   :  { %s103_s17 = scalar_lea.hbm %s158_s2, 128 }
 0x1f2   :  { %p104_p5 = scmp.ne.s32.totalorder %s158_s2, %s103_s17  ;;  %p107_p6 = scmp.lt.u32.totalorder %s103_s17, %s158_s2 }
 0x1f4   :  { %p109_p7 = pnand %p107_p6, %p104_p5 }
 0x1f6   :  { %112 = shalt.err (!%p109_p7)
}
 0x1f7   :  { %76 = dma.vmem_to_hbm [thread:$0]  %s74_s1, 128, %s158_s2, [#allocation5]  }
 0x1f8   :  { %113 = dma.done.wait [#allocation5], 128  }
 0x1f9   :  { %114 = vsyncadd [#allocation5], 4294967168 }
 0x1fa   :  { %80 = vsyncpa [#allocation5], 1 }

</bundles_post_ra>
